<compile_context>
chip_gen: v5e
topology: v5e:2x2
jax: 0.10.0
libtpu: 0.0.40
codegen_flags: <defaults>
</compile_context>

<pallas_src>
from functools import partial

import jax
import jax.numpy as jnp
from jax import lax
from jax.experimental import pallas as pl
from jax.experimental.pallas import tpu as pltpu


# ----------------------------------------------------------------------------- kernels

def _mm_affine_kernel(x_ref, w_ref, cpre_ref, cpost_ref, o_ref, *, pre_relu, post_relu):
    """out = post_affine( W @ pre_affine(x) ); affines are per-channel scale/shift (+opt. ReLU)."""
    x = x_ref[...].astype(jnp.float32)                       # element-wise math in f32 (v5e VPU)
    cpre = cpre_ref[...]
    x = x * cpre[:, 0:1] + cpre[:, 1:2]
    if pre_relu:
        x = jnp.maximum(x, 0.0)
    y = jnp.dot(w_ref[...], x.astype(jnp.bfloat16),          # bf16 MXU operands, f32 accumulate
                preferred_element_type=jnp.float32)          # (Cout, Pt)
    cpost = cpost_ref[...]
    y = y * cpost[:, 0:1] + cpost[:, 1:2]
    if post_relu:
        y = jnp.maximum(y, 0.0)
    o_ref[...] = y.astype(o_ref.dtype)


def _conv3x3_kernel(xf_ref, w_ref, o_ref, *, taps, n_lanes):
    """3x3 / stride-1 conv on a zero-padded, pre-activated input flattened into lanes.

    xf_ref: (Cin, n_lanes + 2*margin) bf16 ; w_ref: (9, Cout, Cin) bf16 ; o_ref: (Cout, n_lanes).
    Each of the 9 taps is one contiguous lane-shifted slice -> one accumulating MXU matmul.
    (No im2col in HBM, no in-kernel reshapes; junk lanes at pad positions are discarded outside.)
    """
    acc = None
    for t, off in enumerate(taps):                            # static 9-tap unroll
        xs = xf_ref[:, off:off + n_lanes]                     # contiguous (Cin, n_lanes) slice
        part = jnp.dot(w_ref[t], xs, preferred_element_type=jnp.float32)
        acc = part if acc is None else acc + part
    o_ref[...] = acc.astype(o_ref.dtype)


def _affine_relu_kernel(x_ref, c_ref, o_ref):
    x = x_ref[...].astype(jnp.float32)
    c = c_ref[...]
    o_ref[...] = jnp.maximum(x * c[:, 0:1] + c[:, 1:2], 0.0).astype(o_ref.dtype)


# ----------------------------------------------------------------------------- wrappers

def _pick_lane_tile(p):
    for t in (2048, 1024, 512, 256, 128):
        if p >= t and p % t == 0:
            return t
    return p


def _bn_consts(bn, eps=1e-5):
    scale = bn["gamma"] / jnp.sqrt(bn["var"] + eps)
    shift = bn["beta"] - bn["mean"] * scale
    return jnp.stack([scale, shift], axis=1).astype(jnp.float32)      # packed (C, 2)


def _identity_consts(c):
    return jnp.concatenate([jnp.ones((c, 1), jnp.float32),
                            jnp.zeros((c, 1), jnp.float32)], axis=1)


def fused_affine_matmul(x, w, pre_consts, post_consts, *, pre_relu, post_relu,
                        out_dtype=jnp.bfloat16):
    """(pre-affine [+ReLU]) -> 1x1-conv matmul -> (post-affine [+ReLU]).  x: (Cin, P), w: (Cout, Cin)."""
    cin, p = x.shape
    cout = w.shape[0]
    tp = _pick_lane_tile(p)
    grid = (p // tp,)
    kern = partial(_mm_affine_kernel, pre_relu=pre_relu, post_relu=post_relu)
    flops = 2 * cout * cin * p
    bytes_acc = 2 * (cin * p + cout * cin) + 8 * (cin + cout) + jnp.dtype(out_dtype).itemsize * cout * p
    return pl.pallas_call(
        kern,
        out_shape=jax.ShapeDtypeStruct((cout, p), out_dtype),
        grid=grid,
        in_specs=[
            pl.BlockSpec((cin, tp), lambda i: (0, i)),
            pl.BlockSpec((cout, cin), lambda i: (0, 0)),
            pl.BlockSpec((cin, 2), lambda i: (0, 0)),
            pl.BlockSpec((cout, 2), lambda i: (0, 0)),
        ],
        out_specs=pl.BlockSpec((cout, tp), lambda i: (0, i)),
        compiler_params=pltpu.CompilerParams(dimension_semantics=("parallel",)),
        cost_estimate=pl.CostEstimate(flops=int(flops), transcendentals=0,
                                      bytes_accessed=int(bytes_acc)),
    )(x.astype(jnp.bfloat16), w.astype(jnp.bfloat16),
      pre_consts.astype(jnp.float32), post_consts.astype(jnp.float32))


def fused_conv3x3(a_cnhw, w_oihw, *, out_dtype=jnp.bfloat16):
    """3x3 conv, stride 1, pad 1 on an already-activated (post BN+ReLU) tensor in (C, N, H, W)."""
    cin, n, h, wd = a_cnhw.shape
    cout = w_oihw.shape[0]
    wp = wd + 2
    lp = (h + 2) * wp
    n_lanes = n * lp                       # all images folded into the lane dim
    margin = wd + 3                        # keeps every tap slice in-bounds
    a_pad = jnp.pad(a_cnhw.astype(jnp.bfloat16), ((0, 0), (0, 0), (1, 1), (1, 1)))
    xf = a_pad.reshape(cin, n_lanes)
    xf = jnp.pad(xf, ((0, 0), (margin, margin)))
    taps = tuple(margin + (dh - 1) * wp + (dw - 1) for dh in range(3) for dw in range(3))
    w9 = jnp.transpose(w_oihw, (2, 3, 0, 1)).reshape(9, cout, cin).astype(jnp.bfloat16)
    kern = partial(_conv3x3_kernel, taps=taps, n_lanes=n_lanes)
    flops = 2 * 9 * cout * cin * n_lanes
    bytes_acc = 2 * (cin * (n_lanes + 2 * margin) + 9 * cout * cin + cout * n_lanes)
    yf = pl.pallas_call(
        kern,
        out_shape=jax.ShapeDtypeStruct((cout, n_lanes), out_dtype),
        grid=(1,),
        in_specs=[
            pl.BlockSpec((cin, n_lanes + 2 * margin), lambda i: (0, 0)),
            pl.BlockSpec((9, cout, cin), lambda i: (0, 0, 0)),
        ],
        out_specs=pl.BlockSpec((cout, n_lanes), lambda i: (0, 0)),
        compiler_params=pltpu.CompilerParams(dimension_semantics=("arbitrary",)),
        cost_estimate=pl.CostEstimate(flops=int(flops), transcendentals=0,
                                      bytes_accessed=int(bytes_acc)),
    )(xf, w9)
    # Drop the pad-position lanes; result stays channel-major (C, N, H, W).
    return yf.reshape(cout, n, h + 2, wp)[:, :, 1:h + 1, 1:wd + 1]


def fused_affine_relu(x, consts, *, out_dtype=jnp.float32):
    c, p = x.shape
    tp = _pick_lane_tile(p)
    return pl.pallas_call(
        _affine_relu_kernel,
        out_shape=jax.ShapeDtypeStruct((c, p), out_dtype),
        grid=(p // tp,),
        in_specs=[pl.BlockSpec((c, tp), lambda i: (0, i)),
                  pl.BlockSpec((c, 2), lambda i: (0, 0))],
        out_specs=pl.BlockSpec((c, tp), lambda i: (0, i)),
        compiler_params=pltpu.CompilerParams(dimension_semantics=("parallel",)),
    )(x.astype(jnp.bfloat16), consts.astype(jnp.float32))


# ----------------------------------------------------------------------------- DenseNet forward

def densenet_forward(x_nchw, params, eps=1e-5):
    # One-time NCHW -> CNHW transpose; (C, N*H*W) views are then free reshapes for every stage.
    f = jnp.transpose(x_nchw, (1, 0, 2, 3)).astype(jnp.float32)
    cin, n, h, w = f.shape

    # conv0 (3x3, stride 2, pad 1) + norm0 + relu0.  im2col for the once-per-forward, tiny-Cin stem
    # stays in XLA; the matmul + BN + ReLU runs in the Pallas kernel.
    ho, wo = (h + 2 - 3) // 2 + 1, (w + 2 - 3) // 2 + 1
    xp = jnp.pad(f, ((0, 0), (0, 0), (1, 1), (1, 1)))
    patches = jnp.stack([xp[:, :, dh:dh + 2 * ho:2, dw:dw + 2 * wo:2]
                         for dh in range(3) for dw in range(3)], axis=0)
    patches = patches.reshape(9 * cin, n * ho * wo)
    w0 = jnp.transpose(params["conv0_w"], (0, 2, 3, 1)).reshape(-1, 9 * cin)
    f = fused_affine_matmul(patches, w0, _identity_consts(9 * cin),
                            _bn_consts(params["bn0"], eps), pre_relu=False, post_relu=True)
    f = f.reshape(w0.shape[0], n, ho, wo)

    # pool0: MaxPool2d(2, 2).
    # TODO(synk): pooling runs as an XLA reduce_window, not a Pallas kernel.
    f = lax.reduce_window(f.astype(jnp.float32), -jnp.inf, lax.max,
                          (1, 1, 2, 2), (1, 1, 2, 2), "VALID").astype(jnp.bfloat16)

    for bi, layers in enumerate(params["blocks"]):
        for lyr in layers:
            cf, n_, hc, wc = f.shape
            # norm1 -> relu1 -> conv1(1x1) -> norm2 -> relu2, fused into one matmul kernel.
            mid = fused_affine_matmul(f.reshape(cf, n_ * hc * wc), lyr["conv1_w"],
                                      _bn_consts(lyr["bn1"], eps), _bn_consts(lyr["bn2"], eps),
                                      pre_relu=True, post_relu=True)
            mid = mid.reshape(lyr["conv1_w"].shape[0], n_, hc, wc)
            # conv2 (3x3, pad 1) on the already-activated tensor (zero padding is exact here).
            new = fused_conv3x3(mid, lyr["conv2_w"])
            # TODO(synk): F.dropout skipped (module default drop_rate=0).
            f = jnp.concatenate([f, new.astype(f.dtype)], axis=0)
        if bi < len(params["transitions"]):
            tr = params["transitions"][bi]
            cf, n_, hc, wc = f.shape
            y = fused_affine_matmul(f.reshape(cf, n_ * hc * wc), tr["conv_w"],
                                    _bn_consts(tr["bn"], eps),
                                    _identity_consts(tr["conv_w"].shape[0]),
                                    pre_relu=True, post_relu=False)
            y = y.reshape(tr["conv_w"].shape[0], n_, hc, wc)
            # AvgPool2d(kernel=(2,2), stride=(2,1), padding=(0,1)), count_include_pad=True.
            # TODO(synk): pooling runs as an XLA reduce_window, not a Pallas kernel.
            y = lax.reduce_window(y.astype(jnp.float32), 0.0, lax.add,
                                  (1, 1, 2, 2), (1, 1, 2, 1),
                                  ((0, 0), (0, 0), (0, 0), (1, 1))) * 0.25
            f = y.astype(jnp.bfloat16)

    # norm5 + final ReLU (f32 output), then back to NCHW.
    cf, n_, hc, wc = f.shape
    out = fused_affine_relu(f.reshape(cf, n_ * hc * wc), _bn_consts(params["bn5"], eps))
    return jnp.transpose(out.reshape(cf, n_, hc, wc), (1, 0, 2, 3))


# ----------------------------------------------------------------------------- pure-JAX reference

def densenet_reference(x, params, eps=1e-5):
    hi = jax.lax.Precision.HIGHEST

    def bn(z, b):
        s = b["gamma"] / jnp.sqrt(b["var"] + eps)
        return z * s[None, :, None, None] + (b["beta"] - b["mean"] * s)[None, :, None, None]

    def conv(z, w, stride=(1, 1), pad=((0, 0), (0, 0))):
        return lax.conv_general_dilated(z, w, stride, pad,
                                        dimension_numbers=("NCHW", "OIHW", "NCHW"), precision=hi)

    y = jax.nn.relu(bn(conv(x, params["conv0_w"], (2, 2), ((1, 1), (1, 1))), params["bn0"]))
    y = lax.reduce_window(y, -jnp.inf, lax.max, (1, 1, 2, 2), (1, 1, 2, 2), "VALID")
    for bi, layers in enumerate(params["blocks"]):
        for lyr in layers:
            t = jax.nn.relu(bn(y, lyr["bn1"]))
            t = conv(t, lyr["conv1_w"][:, :, None, None])
            t = jax.nn.relu(bn(t, lyr["bn2"]))
            t = conv(t, lyr["conv2_w"], (1, 1), ((1, 1), (1, 1)))
            y = jnp.concatenate([y, t], axis=1)
        if bi < len(params["transitions"]):
            tr = params["transitions"][bi]
            t = jax.nn.relu(bn(y, tr["bn"]))
            t = conv(t, tr["conv_w"][:, :, None, None])
            y = lax.reduce_window(t, 0.0, lax.add, (1, 1, 2, 2), (1, 1, 2, 1),
                                  ((0, 0), (0, 0), (0, 0), (1, 1))) * 0.25
    return jax.nn.relu(bn(y, params["bn5"]))


# ----------------------------------------------------------------------------- params

def make_densenet_params(key, num_in=4, growth_rate=8, block_config=(2, 2),
                         num_init_features=16, bn_size=2):
    def bn_params(k, c):
        k1, k2, k3, k4 = jax.random.split(k, 4)
        return {"gamma": 1.0 + 0.1 * jax.random.normal(k1, (c,), jnp.float32),
                "beta": 0.1 * jax.random.normal(k2, (c,), jnp.float32),
                "mean": 0.1 * jax.random.normal(k3, (c,), jnp.float32),
                "var": jnp.abs(1.0 + 0.1 * jax.random.normal(k4, (c,), jnp.float32))}

    def conv(k, co, ci, kh, kw):      # kaiming_normal-style init, as in the module
        return jax.random.normal(k, (co, ci, kh, kw), jnp.float32) * jnp.sqrt(2.0 / (ci * kh * kw))

    keys = iter(jax.random.split(key, 64))
    params = {"conv0_w": conv(next(keys), num_init_features, num_in, 3, 3),
              "bn0": bn_params(next(keys), num_init_features),
              "blocks": [], "transitions": []}
    nf = num_init_features
    for i, nl in enumerate(block_config):
        layers = []
        for j in range(nl):
            ci = nf + j * growth_rate
            cm = bn_size * growth_rate
            layers.append({"bn1": bn_params(next(keys), ci),
                           "conv1_w": conv(next(keys), cm, ci, 1, 1)[:, :, 0, 0],
                           "bn2": bn_params(next(keys), cm),
                           "conv2_w": conv(next(keys), growth_rate, cm, 3, 3)})
        params["blocks"].append(layers)
        nf = nf + nl * growth_rate
        if i != len(block_config) - 1:
            params["transitions"].append({"bn": bn_params(next(keys), nf),
                                          "conv_w": conv(next(keys), nf // 2, nf, 1, 1)[:, :, 0, 0]})
            nf = nf // 2
    params["bn5"] = bn_params(next(keys), nf)
    return params


if __name__ == "__main__":
    key = jax.random.PRNGKey(0)
    kx, kp = jax.random.split(key)
    x = jax.random.normal(kx, (2, 4, 16, 16), jnp.float32)              # NCHW
    params = make_densenet_params(kp, num_in=4, growth_rate=8, block_config=(2, 2),
                                  num_init_features=16, bn_size=2)

    out = densenet_forward(x, params)
    out = jax.block_until_ready(out)
    assert out.shape == (2, 32, 2, 5), out.shape

    ref = jax.block_until_ready(densenet_reference(x, params))
    err = float(jnp.max(jnp.abs(out - ref)))
    scale = float(jnp.max(jnp.abs(ref)))
    # bf16 inter-layer activations + bf16 MXU operands (f32 accumulate) across ~6 conv stages.
    assert err <= 3e-2 * max(scale, 1.0), f"max abs err {err} (ref max {scale})"
    print("KERNEL_OK")
</pallas_src>

<mosaic_0001>
module attributes {stable_mosaic.version = 11 : i64} {
  func.func @_mm_affine_kernel(%arg0: i32, %arg1: memref<36x128xbf16, #tpu.memory_space<vmem>>, %arg2: memref<16x36xbf16, #tpu.memory_space<vmem>>, %arg3: memref<36x2xf32, #tpu.memory_space<vmem>>, %arg4: memref<16x2xf32, #tpu.memory_space<vmem>>, %arg5: memref<16x128xbf16, #tpu.memory_space<vmem>>) attributes {dimension_semantics = [#tpu.dimension_semantics<parallel>], iteration_bounds = array<i64: 1>, scalar_prefetch = 0 : i64, scratch_operands = 0 : i64, tpu.core_type = #tpu.core_type<tc>, window_params = [{transform_indices = @transform_0, window_bounds = array<i64: 36, 128>}, {pipeline_mode = #tpu.pipeline_mode<synchronous>, transform_indices = @transform_1, window_bounds = array<i64: 16, 36>}, {pipeline_mode = #tpu.pipeline_mode<synchronous>, transform_indices = @transform_2, window_bounds = array<i64: 36, 2>}, {pipeline_mode = #tpu.pipeline_mode<synchronous>, transform_indices = @transform_3, window_bounds = array<i64: 16, 2>}, {transform_indices = @transform_4, window_bounds = array<i64: 16, 128>}]} {
    %c0 = arith.constant 0 : index
    %c0_0 = arith.constant 0 : index
    %0 = vector.load %arg1[%c0, %c0_0] : memref<36x128xbf16, #tpu.memory_space<vmem>>, vector<36x128xbf16>
    %1 = arith.extf %0 : vector<36x128xbf16> to vector<36x128xf32>
    %c0_1 = arith.constant 0 : index
    %c0_2 = arith.constant 0 : index
    %2 = vector.load %arg3[%c0_1, %c0_2] : memref<36x2xf32, #tpu.memory_space<vmem>>, vector<36x2xf32>
    %3 = vector.extract_strided_slice %2 {offsets = [0, 0], sizes = [36, 1], strides = [1, 1]} : vector<36x2xf32> to vector<36x1xf32>
    %4 = vector.broadcast %3 : vector<36x1xf32> to vector<36x128xf32>
    %5 = arith.mulf %1, %4 : vector<36x128xf32>
    %6 = vector.extract_strided_slice %2 {offsets = [0, 1], sizes = [36, 1], strides = [1, 1]} : vector<36x2xf32> to vector<36x1xf32>
    %7 = vector.broadcast %6 : vector<36x1xf32> to vector<36x128xf32>
    %8 = arith.addf %5, %7 : vector<36x128xf32>
    %c0_3 = arith.constant 0 : index
    %c0_4 = arith.constant 0 : index
    %9 = vector.load %arg2[%c0_3, %c0_4] : memref<16x36xbf16, #tpu.memory_space<vmem>>, vector<16x36xbf16>
    %10 = arith.truncf %8 : vector<36x128xf32> to vector<36x128xbf16>
    %cst = arith.constant dense<0.000000e+00> : vector<16x128xf32>
    %11 = tpu.matmul %9, %10, %cst {dimension_numbers = #tpu.dot_dimension_numbers<[1], [0], [0], [1], [0, 0, 1, 1], [], []>} : vector<16x36xbf16>, vector<36x128xbf16>, vector<16x128xf32> -> vector<16x128xf32>
    %c0_5 = arith.constant 0 : index
    %c0_6 = arith.constant 0 : index
    %12 = vector.load %arg4[%c0_5, %c0_6] : memref<16x2xf32, #tpu.memory_space<vmem>>, vector<16x2xf32>
    %13 = vector.extract_strided_slice %12 {offsets = [0, 0], sizes = [16, 1], strides = [1, 1]} : vector<16x2xf32> to vector<16x1xf32>
    %14 = vector.broadcast %13 : vector<16x1xf32> to vector<16x128xf32>
    %15 = arith.mulf %11, %14 : vector<16x128xf32>
    %16 = vector.extract_strided_slice %12 {offsets = [0, 1], sizes = [16, 1], strides = [1, 1]} : vector<16x2xf32> to vector<16x1xf32>
    %17 = vector.broadcast %16 : vector<16x1xf32> to vector<16x128xf32>
    %18 = arith.addf %15, %17 : vector<16x128xf32>
    %cst_7 = arith.constant 0.000000e+00 : f32
    %19 = vector.broadcast %cst_7 : f32 to vector<16x128xf32>
    %20 = arith.maximumf %18, %19 : vector<16x128xf32>
    %21 = arith.truncf %20 : vector<16x128xf32> to vector<16x128xbf16>
    %c0_8 = arith.constant 0 : index
    %c0_9 = arith.constant 0 : index
    %22 = vector.load %arg5[%c0_8, %c0_9] : memref<16x128xbf16, #tpu.memory_space<vmem>>, vector<16x128xbf16>
    tpu.vector_store %arg5[%c0_8, %c0_9], %21 {strides = array<i32>} : memref<16x128xbf16, #tpu.memory_space<vmem>>, vector<16x128xbf16>,
    return
  }
  func.func @transform_0(%arg0: i32) -> (i32, i32) {
    %c0_i32 = arith.constant 0 : i32
    %c0_i32_0 = arith.constant 0 : i32
    return %c0_i32, %arg0 : i32, i32
  }
  func.func @transform_1(%arg0: i32) -> (i32, i32) {
    %c0_i32 = arith.constant 0 : i32
    %c0_i32_0 = arith.constant 0 : i32
    %c0_i32_1 = arith.constant 0 : i32
    return %c0_i32, %c0_i32_0 : i32, i32
  }
  func.func @transform_2(%arg0: i32) -> (i32, i32) {
    %c0_i32 = arith.constant 0 : i32
    %c0_i32_0 = arith.constant 0 : i32
    %c0_i32_1 = arith.constant 0 : i32
    return %c0_i32, %c0_i32_0 : i32, i32
  }
  func.func @transform_3(%arg0: i32) -> (i32, i32) {
    %c0_i32 = arith.constant 0 : i32
    %c0_i32_0 = arith.constant 0 : i32
    %c0_i32_1 = arith.constant 0 : i32
    return %c0_i32, %c0_i32_0 : i32, i32
  }
  func.func @transform_4(%arg0: i32) -> (i32, i32) {
    %c0_i32 = arith.constant 0 : i32
    %c0_i32_0 = arith.constant 0 : i32
    return %c0_i32, %arg0 : i32, i32
  }
}

</mosaic_0001>

<bundles_post_ra>
// kernel: tpu_custom_call.1
= control target key start
LH: loop header
LB: loop body
LE: loop exit
PB: predicated region body
PF: predicated region fallthrough
CT: control target
= control target key end

     0   :  { %v229_v2 = vmov 0   ;;  %s295_s0 = inlined_call_operand.vmem [shape: bf16[36,128], index: 0, kind: input, shape index: {}]   ;;  %s296_s1 = inlined_call_operand.vmem [shape: bf16[16,36], index: 1, kind: input, shape index: {}]   ;;  %s297_s2 = inlined_call_operand.vmem [shape: f32[36,2], index: 2, kind: input, shape index: {}]   ;;  %s298_s3 = inlined_call_operand.vmem [shape: f32[16,2], index: 3, kind: input, shape index: {}]   ;;  %s299_s4 = inlined_call_operand.hbm [shape: bf16[16,128], index: 4, kind: output, shape index: {}]  }
   0x1   :  { %v33_v0 = vld [vmem:[%s297_s2 + $0x20] sm:$0xf]  ;;  %v31_v1 = vld [vmem:[%s297_s2 + $0x10] sm:$0xff]  ;;  %196 = vset.pattern.permute.xlu1 %v229_v2  ;;  %194 = vset.pattern.permute.xlu0 %v229_v2 }
   0x2   :  { %56 = vperm.xlu0 %194, %v33_v0   ;;  %46 = vperm.xlu1 %196, %v31_v1  }
   0x3   :  { %9 = vsyncpa [#allocation3], 0  ;;  %v230_v3 = vmov 1   ;;  %v32_v4 = vld [vmem:[%s297_s2 + $0x18] sm:$0xff]  ;;  %v29_v5 = vld [vmem:[%s297_s2] sm:$0xff]  ;;  %vm103_vm0 = vcmask 1041408  }
   0x4   :  { %197 = vset.pattern.permute.xlu2 %v230_v3  ;;  %v30_v6 = vld [vmem:[%s297_s2 + $0x8] sm:$0xff]  ;;  %v121_v7 = vld [vmem:[%s298_s3] sm:$0xff]  ;;  %v23_v8 = vld [vmem:[%s295_s0 + $0x10] sm:$0x3]  ;;  %vm99_vm1 = vcmask 293888   ;;  %s157_s12 = sshll.u32 %s299_s4, 4  ;;  %s158_s12 = int_to_ptr.hbm [resolvable:$true] %s157_s12 }
   0x5   :  { %73 = vperm.xlu2 %197, %v31_v1   ;;  %v122_v12 = vld [vmem:[%s298_s3 + $0x8] sm:$0xff]  ;;  %v28_v13 = vunpack.c.l.bf16 %v23_v8  ;;  %v176_v28 = vld [vmem:[%s295_s0] sm:$0xff]   ;;  %s233_s13 = smov 4  }
   0x6   :  { %v188_v14 = vld [vmem:[%s295_s0 + $0x8] sm:$0xff]   ;;  %v178_v31 = vunpack.c.h.bf16 %v176_v28  ;;  %v177_v32 = vunpack.c.l.bf16 %v176_v28  ;;  %v174_v41 = vld [vmem:[%s296_s1] sm:$0xff]  ;;  %s231_s0 = smov [#allocation2]   ;;  %s232_s1 = smov 64  }
   0x7   :  { %v182_v15 = vunpack.c.h.bf16 %v188_v14  ;;  %v181_v17 = vunpack.c.l.bf16 %v188_v14  ;;  %s155_s9 = sshll.u32 %s231_s0, 4  ;;  %s156_s9 = int_to_ptr.vmem [resolvable:$true] %s155_s9 }
   0xa   :  { %195 = vset.pattern.permute.xlu0 %v230_v3  ;;  %51 = vperm.xlu1 %196, %v32_v4  }
   0xb   :  { %81 = vperm.xlu0 %195, %v33_v0  }
   0xd   :  { %77 = vperm.xlu2 %197, %v32_v4  }
  0x12   :  { %36 = vperm.xlu1 %196, %v29_v5  }
  0x13   :  { %65 = vperm.xlu0 %195, %v29_v5  }
  0x15   :  { %198 = vset.pattern.permute.xlu2 %v229_v2 }
  0x16   :  { %41 = vperm.xlu2 %198, %v30_v6  }
  0x1a   :  { %199 = vset.pattern.permute.xlu1 %v230_v3 }
  0x1b   :  { %69 = vperm.xlu1 %199, %v30_v6   ;;  %200 = vset.pattern.permute.xlu0 %v229_v2 }
  0x1c   :  { %130 = vperm.xlu0 %200, %v122_v12  }
  0x1e   :  { %125 = vperm.xlu2 %198, %v121_v7  }
  0x23   :  { %136 = vperm.xlu1 %199, %v121_v7  }
  0x24   :  { %202 = vset.pattern.permute.xlu0 %v230_v3 }
  0x26   :  { %201 = vset.pattern.permute.xlu2 %v230_v3 }
  0x27   :  { %140 = vperm.xlu2 %201, %v122_v12  }
  0x5f   :  { %v74_v11 = vpop.permute.xlu2 %73 }
  0x67   :  { %v78_v23 = vpop.permute.xlu2 %77 }
  0x70   :  { %v42_v33 = vpop.permute.xlu2 %41 }
  0x71   :  { %v60_v34 = vmul.f32 %v178_v31, %v42_v33 }
  0x74   :  { %v47_v9 = vpop.permute.xlu1 %46  ;;  %v57_v10 = vpop.permute.xlu0 %56 }
  0x75   :  { %v63_v16 = vmul.f32 %v57_v10, %v28_v13  ;;  %v61_v22 = vmul.f32 %v181_v17, %v47_v9 }
  0x77   :  { %v86_v27 = vadd.f32 %v74_v11, %v61_v22 }
  0x78   :  { %v126_v42 = vpop.permute.xlu2 %125 }
  0x7c   :  { %v52_v18 = vpop.permute.xlu1 %51 }
  0x7d   :  { %v62_v19 = vmul.f32 %v182_v15, %v52_v18  ;;  %v82_v20 = vpop.permute.xlu0 %81 }
  0x7e   :  { %v88_v21 = vadd.f32 %v82_v20, %v63_v16 }
  0x7f   :  { %v87_v25 = vadd.f32 %v78_v23, %v62_v19 }
  0x80   :  { %v93_v24 = vpack.c.bf16 %v88_v21, %v88_v21 }
  0x81   :  { %v92_v30 = vpack.c.bf16 %v87_v25, %v86_v27  ;;  %v141_v48 = vpop.permute.xlu2 %140 }
  0x82   :  { %v105_v26 = vsel %vm103_vm0, %v93_v24, 0 }
  0x83   :  { %112 = vmatpush.bf16.msra.mxu0 %v105_v26 }
  0x84   :  { %v37_v29 = vpop.permute.xlu1 %36 }
  0x85   :  { %v59_v35 = vmul.f32 %v177_v32, %v37_v29  ;;  %v66_v36 = vpop.permute.xlu0 %65 }
  0x87   :  { %113 = vmatpush.bf16.msra.mxu0 %v92_v30  ;;  %v84_v38 = vadd.f32 %v66_v36, %v59_v35 }
  0x8d   :  { %v70_v37 = vpop.permute.xlu1 %69 }
  0x8e   :  { %v85_v39 = vadd.f32 %v70_v37, %v60_v34  ;;  %v131_v45 = vpop.permute.xlu0 %130 }
  0x90   :  { %v91_v40 = vpack.c.bf16 %v85_v39, %v84_v38 }
  0x92   :  { %114 = vmatpush.bf16.msra.mxu0 %v91_v40 }
  0x95   :  { %173 = vmatmul.msk.bf16.vlgmr.msra.gmra.mxu0 %vm99_vm1, %v174_v41  ;;  %v137_v46 = vpop.permute.xlu1 %136 }
 0x112   :  { %v116_v43 = vpop.f32.mrf.mxu0 }
 0x113   :  { %v133_v44 = vmul.f32 %v126_v42, %v116_v43 }
 0x115   :  { %v143_v49 = vadd.f32 %v137_v46, %v133_v44 }
 0x117   :  { %v145_v52 = vmax.f32 %v143_v49, 0.0 }
 0x11a   :  { %v118_v47 = vpop.f32.mrf.mxu0 }
 0x11b   :  { %v134_v50 = vmul.f32 %v131_v45, %v118_v47 }
 0x11d   :  { %v144_v51 = vadd.f32 %v141_v48, %v134_v50 }
 0x11f   :  { %v146_v53 = vmax.f32 %v144_v51, 0.0 }
 0x121   :  { %v186_v54 = vpack.c.bf16 %v146_v53, %v145_v52 }
 0x123   :  { %187 = vst [vmem:[#allocation2] sm:$0xff] %v186_v54  }
 0x124   :  { %163 = dma.vmem_to_hbm [thread:$0]  %s156_s9, 128, %s158_s12, [#allocation3], %s232_s1, %s232_s1, %s233_s13  }
 0x125   :  { %227 = dma.done.wait [#allocation3], 128  }
 0x126   :  { %228 = vsyncadd [#allocation3], 4294967168 }
 0x127   :  { %168 = vsyncpa [#allocation3], 1 }

</bundles_post_ra>
